<compile_context>
chip_gen: v7x
topology: tpu7x:2x2x1
jax: 0.10.0
libtpu: 0.0.40
codegen_flags: <defaults>
</compile_context>

<pallas_src>
import functools

import jax
import jax.numpy as jnp
from jax.experimental import pallas as pl
from jax.experimental.pallas import tpu as pltpu


def _gelu(v):
    # TODO(synk): nn.GELU() default is the exact erf formulation; the tanh
    # approximation is used here for robust Mosaic lowering (diff ~1e-3).
    c = 0.7978845608028654  # sqrt(2/pi)
    return 0.5 * v * (1.0 + jnp.tanh(c * (v + 0.044715 * v * v * v)))


def mixer_kernel(x_ref, g_ref, b_ref,
                 wt1t_ref, bt1_ref, wt2t_ref, bt2_ref,
                 wc1_ref, bc1_ref, wc2_ref, bc2_ref,
                 o_ref, out_sc,
                 *, tb: int, n: int, d: int, tk: int, ch: int, ch_chunk: int,
                 mix_weight: float, eps: float):
    gamma = g_ref[...].astype(jnp.float32)          # (1, D)
    beta = b_ref[...].astype(jnp.float32)           # (1, D)
    w = jnp.float32(mix_weight)
    cw = jnp.float32(1.0 - mix_weight)

    def layernorm(v):                               # v: (M, D) f32, row-wise over D
        mu = jnp.mean(v, axis=-1, keepdims=True)
        var = jnp.mean(jnp.square(v - mu), axis=-1, keepdims=True)
        return (v - mu) * jax.lax.rsqrt(var + eps) * gamma + beta

    # ---- token-mixing MLP (acts along the patch axis N), transpose-free ----
    wt1t = wt1t_ref[...]                            # (Tk, N) bf16  (= wt1.T)
    wt2t = wt2t_ref[...]                            # (N, Tk) bf16  (= wt2.T)
    # Hoisted bias broadcasts (would otherwise re-materialize TB times).
    bt1_b = jnp.broadcast_to(bt1_ref[...].astype(jnp.float32), (tk, d))
    bt2_b = jnp.broadcast_to(bt2_ref[...].astype(jnp.float32), (n, d))

    for bi in range(tb):                            # unrolled; TB <= 8
        xb = x_ref[bi].astype(jnp.float32)          # (N, D)
        ln1_b = layernorm(xb).astype(jnp.bfloat16)  # (N, D)
        # h^T = wt1.T @ ln1_b -> (Tk, D): standard MXU matmul, no vxpose.
        h_t = jnp.dot(wt1t, ln1_b, preferred_element_type=jnp.float32)
        h_t = _gelu(h_t + bt1_b)                    # (Tk, D) f32
        # tok_b = wt2.T @ h^T -> (N, D): equals (gelu(.) @ wt2).T directly.
        tok_b = jnp.dot(wt2t, h_t.astype(jnp.bfloat16),
                        preferred_element_type=jnp.float32)
        # Residual mix written straight into the flat scratch: no concat/relayout.
        out_sc[pl.ds(bi * n, n), :] = xb * w + (tok_b + bt2_b) * cw

    out = out_sc[...]                               # (TB*N, D) f32
    ln2 = layernorm(out).astype(jnp.bfloat16)       # (TB*N, D)

    # ---- channel-mixing MLP, K-tiled over channel_dim (caps the f32 temp) ----
    chan = jnp.broadcast_to(bc2_ref[...].astype(jnp.float32), (tb * n, d))
    for ci in range(ch // ch_chunk):
        c0 = ci * ch_chunk
        w1c = wc1_ref[:, pl.ds(c0, ch_chunk)]                        # (D, chunk) bf16
        b1c = bc1_ref[:, pl.ds(c0, ch_chunk)].astype(jnp.float32)    # (1, chunk)
        w2c = wc2_ref[pl.ds(c0, ch_chunk), :]                        # (chunk, D) bf16
        h = jnp.dot(ln2, w1c, preferred_element_type=jnp.float32)    # (TB*N, chunk) f32
        h = _gelu(h + b1c)
        chan = chan + jnp.dot(h.astype(jnp.bfloat16), w2c,
                              preferred_element_type=jnp.float32)    # (TB*N, D) f32

    out2 = out * w + chan * cw
    o_ref[...] = out2.reshape(tb, n, d).astype(o_ref.dtype)


def _pick_tb(batch: int) -> int:
    # Largest batch slab such that the grid keeps >= 2 steps (keeps v7x's
    # second TensorCore busy); falls back to the largest divisor otherwise.
    for t in (8, 4, 2, 1):
        if batch % t == 0 and batch // t >= 2:
            return t
    return max(t for t in (8, 4, 2, 1) if batch % t == 0)


def _pick_ch_chunk(channel_dim: int) -> int:
    if channel_dim <= 1024:
        return channel_dim
    for c in (1024, 512, 256, 128):
        if channel_dim % c == 0:
            return c
    return channel_dim


def _pick_vmem_limit() -> int:
    # ~75% of physical VMEM, capped at 100 MiB: ~96 MiB on v5e/v6e (128 MiB),
    # ~48 MiB on v7x (64 MiB). Conservative fallback if the query fails.
    try:
        cap = int(pltpu.get_tpu_info().vmem_capacity_bytes)
    except Exception:
        cap = 64 << 20
    return int(min(cap * 3 // 4, 100 << 20))


def mixer_struc(x, params, *, mix_weight=0.5, eps=1e-5):
    """x: (B, N, D). params: LayerNorm + token/channel MLP weights (PyTorch-style)."""
    B, N, D = x.shape
    gamma, beta, wt1, bt1, wt2, bt2, wc1, bc1, wc2, bc2 = params
    Tk = wt1.shape[1]
    Ch = wc1.shape[1]

    # One-time, outside-kernel prep: pre-transpose token weights so every
    # in-kernel matmul is standard, reshape token biases to columns, cast all
    # matmul weights to bf16 (halves weight DMA / VMEM, MXU accumulates f32).
    wt1_t = jnp.asarray(wt1, jnp.float32).T.astype(jnp.bfloat16)   # (Tk, N)
    wt2_t = jnp.asarray(wt2, jnp.float32).T.astype(jnp.bfloat16)   # (N, Tk)
    wc1_b = jnp.asarray(wc1, jnp.bfloat16)                         # (D, Ch)
    wc2_b = jnp.asarray(wc2, jnp.bfloat16)                         # (Ch, D)
    bt1_c = jnp.asarray(bt1, jnp.float32).reshape(Tk, 1)           # (Tk, 1)
    bt2_c = jnp.asarray(bt2, jnp.float32).reshape(N, 1)            # (N, 1)
    bc1_r = jnp.asarray(bc1, jnp.float32).reshape(1, Ch)
    bc2_r = jnp.asarray(bc2, jnp.float32).reshape(1, D)
    gamma_r = jnp.asarray(gamma, jnp.float32).reshape(1, D)
    beta_r = jnp.asarray(beta, jnp.float32).reshape(1, D)

    TB = _pick_tb(B)
    ch_chunk = _pick_ch_chunk(Ch)
    grid = (B // TB,)

    kernel = functools.partial(mixer_kernel, tb=TB, n=N, d=D, tk=Tk, ch=Ch,
                               ch_chunk=ch_chunk, mix_weight=float(mix_weight),
                               eps=float(eps))

    flops = 4 * B * N * D * (Tk + Ch)                # 2 matmuls per branch, 2*M*N*K each
    transcendentals = B * (D * Tk + N * Ch)          # one tanh per GELU element
    bytes_accessed = (
        2 * x.size * x.dtype.itemsize
        + 2 * (wt1_t.size + wt2_t.size + wc1_b.size + wc2_b.size)
        + 4 * (bt1_c.size + bt2_c.size + bc1_r.size + bc2_r.size
               + gamma_r.size + beta_r.size))
    cost = pl.CostEstimate(flops=int(flops),
                           transcendentals=int(transcendentals),
                           bytes_accessed=int(bytes_accessed))

    args = (x, gamma_r, beta_r, wt1_t, bt1_c, wt2_t, bt2_c,
            wc1_b, bc1_r, wc2_b, bc2_r)

    def build(single_buffer_weights: bool):
        def const(shape):
            kw = {}
            if single_buffer_weights:
                # Constant index map -> block never changes; double-buffering
                # it would only double its VMEM footprint.
                kw["pipeline_mode"] = pl.Buffered(1)
            return pl.BlockSpec(shape, lambda *a, _n=len(shape): (0,) * _n, **kw)

        grid_spec = pltpu.PrefetchScalarGridSpec(
            num_scalar_prefetch=0,
            grid=grid,
            in_specs=[
                pl.BlockSpec((TB, N, D), lambda i: (i, 0, 0)),   # x slab (streamed)
                const((1, D)), const((1, D)),                    # LayerNorm gamma, beta
                const((Tk, N)), const((Tk, 1)),                  # token fc1 W^T, b (column)
                const((N, Tk)), const((N, 1)),                   # token fc2 W^T, b (column)
                const((D, Ch)), const((1, Ch)),                  # chan fc1 W, b
                const((Ch, D)), const((1, D)),                   # chan fc2 W, b
            ],
            out_specs=pl.BlockSpec((TB, N, D), lambda i: (i, 0, 0)),
            scratch_shapes=[pltpu.VMEM((TB * N, D), jnp.float32)],  # token-branch/residual slab
        )
        return pl.pallas_call(
            kernel,
            out_shape=jax.ShapeDtypeStruct((B, N, D), x.dtype),
            grid_spec=grid_spec,
            compiler_params=pltpu.CompilerParams(
                dimension_semantics=("parallel",),
                vmem_limit_bytes=_pick_vmem_limit()),
            cost_estimate=cost,
        )

    try:
        out = build(True)(*args)
        return jax.block_until_ready(out)
    except Exception:
        # Fallback: some JAX builds reject pl.Buffered(1); default buffering
        # is functionally identical (just uses more VMEM for the weights).
        out = build(False)(*args)
        return jax.block_until_ready(out)


def reference(x, params, *, mix_weight=0.5, eps=1e-5):
    gamma, beta, wt1, bt1, wt2, bt2, wc1, bc1, wc2, bc2 = params

    def layernorm(v):
        mu = jnp.mean(v, axis=-1, keepdims=True)
        var = jnp.mean((v - mu) ** 2, axis=-1, keepdims=True)
        return (v - mu) * jax.lax.rsqrt(var + eps) * gamma + beta

    w = mix_weight
    ln1 = layernorm(x)
    t = jnp.swapaxes(ln1, 1, 2)                       # (B, D, N)
    tok = _gelu(t @ wt1 + bt1) @ wt2 + bt2            # (B, D, N)
    tok = jnp.swapaxes(tok, 1, 2)                     # (B, N, D)
    out = x * w + tok * (1.0 - w)
    ln2 = layernorm(out)
    chan = _gelu(ln2 @ wc1 + bc1) @ wc2 + bc2
    return out * w + chan * (1.0 - w)


if __name__ == "__main__":
    # Small shapes consistent with the module: batch=2, patches=8, dim=32,
    # token_dim=16, channel_dim=64, weight=0.5.
    B, N, D = 2, 8, 32
    token_dim, channel_dim = 16, 64
    mix_weight = 0.5

    key = jax.random.PRNGKey(0)
    kx, k1, k2, k3, k4 = jax.random.split(key, 5)
    x = jax.random.normal(kx, (B, N, D), dtype=jnp.float32)

    params = (
        jnp.ones((1, D), jnp.float32),                                   # LN gamma
        jnp.zeros((1, D), jnp.float32),                                  # LN beta
        0.1 * jax.random.normal(k1, (N, token_dim), jnp.float32),        # token fc1 W
        jnp.zeros((1, token_dim), jnp.float32),                          # token fc1 b
        0.1 * jax.random.normal(k2, (token_dim, N), jnp.float32),        # token fc2 W
        jnp.zeros((1, N), jnp.float32),                                  # token fc2 b
        0.1 * jax.random.normal(k3, (D, channel_dim), jnp.float32),      # chan fc1 W
        jnp.zeros((1, channel_dim), jnp.float32),                        # chan fc1 b
        0.1 * jax.random.normal(k4, (channel_dim, D), jnp.float32),      # chan fc2 W
        jnp.zeros((1, D), jnp.float32),                                  # chan fc2 b
    )

    out = mixer_struc(x, params, mix_weight=mix_weight)
    out = jax.block_until_ready(out)

    ref = reference(x, params, mix_weight=mix_weight)
    assert out.shape == (B, N, D)
    # bf16 MXU operands in the kernel vs f32 reference -> ~1e-3 divergence.
    assert jnp.allclose(out, ref, rtol=2e-2, atol=2e-2), "mismatch vs JAX reference"

    print("KERNEL_OK")
</pallas_src>

<mosaic_0001>
module attributes {stable_mosaic.version = 11 : i64} {
  func.func @mixer_kernel(%arg0: i32, %arg1: memref<1x8x32xf32, #tpu.memory_space<vmem>>, %arg2: memref<1x32xf32, #tpu.memory_space<vmem>>, %arg3: memref<1x32xf32, #tpu.memory_space<vmem>>, %arg4: memref<16x8xbf16, #tpu.memory_space<vmem>>, %arg5: memref<16x1xf32, #tpu.memory_space<vmem>>, %arg6: memref<8x16xbf16, #tpu.memory_space<vmem>>, %arg7: memref<8x1xf32, #tpu.memory_space<vmem>>, %arg8: memref<32x64xbf16, #tpu.memory_space<vmem>>, %arg9: memref<1x64xf32, #tpu.memory_space<vmem>>, %arg10: memref<64x32xbf16, #tpu.memory_space<vmem>>, %arg11: memref<1x32xf32, #tpu.memory_space<vmem>>, %arg12: memref<1x8x32xf32, #tpu.memory_space<vmem>>, %arg13: memref<8x32xf32, #tpu.memory_space<vmem>>) attributes {dimension_semantics = [#tpu.dimension_semantics<parallel>], iteration_bounds = array<i64: 2>, scalar_prefetch = 0 : i64, scratch_operands = 1 : i64, tpu.core_type = #tpu.core_type<tc>, window_params = [{transform_indices = @transform_0, window_bounds = array<i64: 1, 8, 32>}, {pipeline_mode = #tpu.pipeline_mode<synchronous>, transform_indices = @transform_1, window_bounds = array<i64: 1, 32>}, {pipeline_mode = #tpu.pipeline_mode<synchronous>, transform_indices = @transform_2, window_bounds = array<i64: 1, 32>}, {pipeline_mode = #tpu.pipeline_mode<synchronous>, transform_indices = @transform_3, window_bounds = array<i64: 16, 8>}, {pipeline_mode = #tpu.pipeline_mode<synchronous>, transform_indices = @transform_4, window_bounds = array<i64: 16, 1>}, {pipeline_mode = #tpu.pipeline_mode<synchronous>, transform_indices = @transform_5, window_bounds = array<i64: 8, 16>}, {pipeline_mode = #tpu.pipeline_mode<synchronous>, transform_indices = @transform_6, window_bounds = array<i64: 8, 1>}, {pipeline_mode = #tpu.pipeline_mode<synchronous>, transform_indices = @transform_7, window_bounds = array<i64: 32, 64>}, {pipeline_mode = #tpu.pipeline_mode<synchronous>, transform_indices = @transform_8, window_bounds = array<i64: 1, 64>}, {pipeline_mode = #tpu.pipeline_mode<synchronous>, transform_indices = @transform_9, window_bounds = array<i64: 64, 32>}, {pipeline_mode = #tpu.pipeline_mode<synchronous>, transform_indices = @transform_10, window_bounds = array<i64: 1, 32>}, {transform_indices = @transform_11, window_bounds = array<i64: 1, 8, 32>}]} {
    %c0 = arith.constant 0 : index
    %c0_0 = arith.constant 0 : index
    %0 = vector.load %arg2[%c0, %c0_0] : memref<1x32xf32, #tpu.memory_space<vmem>>, vector<1x32xf32>
    %c0_1 = arith.constant 0 : index
    %c0_2 = arith.constant 0 : index
    %1 = vector.load %arg3[%c0_1, %c0_2] : memref<1x32xf32, #tpu.memory_space<vmem>>, vector<1x32xf32>
    %c0_3 = arith.constant 0 : index
    %c0_4 = arith.constant 0 : index
    %2 = vector.load %arg4[%c0_3, %c0_4] : memref<16x8xbf16, #tpu.memory_space<vmem>>, vector<16x8xbf16>
    %c0_5 = arith.constant 0 : index
    %c0_6 = arith.constant 0 : index
    %3 = vector.load %arg6[%c0_5, %c0_6] : memref<8x16xbf16, #tpu.memory_space<vmem>>, vector<8x16xbf16>
    %c0_7 = arith.constant 0 : index
    %c0_8 = arith.constant 0 : index
    %4 = vector.load %arg5[%c0_7, %c0_8] : memref<16x1xf32, #tpu.memory_space<vmem>>, vector<16x1xf32>
    %5 = vector.shape_cast %4 : vector<16x1xf32> to vector<16x1xf32>
    %6 = vector.broadcast %5 : vector<16x1xf32> to vector<16x32xf32>
    %c0_9 = arith.constant 0 : index
    %c0_10 = arith.constant 0 : index
    %7 = vector.load %arg7[%c0_9, %c0_10] : memref<8x1xf32, #tpu.memory_space<vmem>>, vector<8x1xf32>
    %8 = vector.shape_cast %7 : vector<8x1xf32> to vector<8x1xf32>
    %9 = vector.broadcast %8 : vector<8x1xf32> to vector<8x32xf32>
    %c0_11 = arith.constant 0 : index
    %c0_12 = arith.constant 0 : index
    %c0_13 = arith.constant 0 : index
    %10 = vector.load %arg1[%c0_11, %c0_12, %c0_13] : memref<1x8x32xf32, #tpu.memory_space<vmem>>, vector<1x8x32xf32>
    %11 = vector.shape_cast %10 : vector<1x8x32xf32> to vector<8x32xf32>
    %cst = arith.constant dense<0.000000e+00> : vector<8xf32>
    %12 = vector.multi_reduction <add>, %11, %cst [1] : vector<8x32xf32> to vector<8xf32>
    %13 = vector.shape_cast %12 : vector<8xf32> to vector<8x1xf32>
    %cst_14 = arith.constant 3.200000e+01 : f32
    %14 = vector.broadcast %cst_14 : f32 to vector<8x1xf32>
    %15 = arith.divf %13, %14 : vector<8x1xf32>
    %16 = vector.broadcast %15 : vector<8x1xf32> to vector<8x32xf32>
    %17 = arith.subf %11, %16 : vector<8x32xf32>
    %18 = arith.mulf %17, %17 : vector<8x32xf32>
    %cst_15 = arith.constant dense<0.000000e+00> : vector<8xf32>
    %19 = vector.multi_reduction <add>, %18, %cst_15 [1] : vector<8x32xf32> to vector<8xf32>
    %20 = vector.shape_cast %19 : vector<8xf32> to vector<8x1xf32>
    %cst_16 = arith.constant 3.200000e+01 : f32
    %21 = vector.broadcast %cst_16 : f32 to vector<8x1xf32>
    %22 = arith.divf %20, %21 : vector<8x1xf32>
    %23 = vector.broadcast %15 : vector<8x1xf32> to vector<8x32xf32>
    %24 = arith.subf %11, %23 : vector<8x32xf32>
    %cst_17 = arith.constant 9.99999974E-6 : f32
    %25 = vector.broadcast %cst_17 : f32 to vector<8x1xf32>
    %26 = arith.addf %22, %25 : vector<8x1xf32>
    %27 = math.rsqrt %26 : vector<8x1xf32>
    %28 = vector.broadcast %27 : vector<8x1xf32> to vector<8x32xf32>
    %29 = arith.mulf %24, %28 : vector<8x32xf32>
    %30 = vector.broadcast %0 : vector<1x32xf32> to vector<8x32xf32>
    %31 = arith.mulf %29, %30 : vector<8x32xf32>
    %32 = vector.broadcast %1 : vector<1x32xf32> to vector<8x32xf32>
    %33 = arith.addf %31, %32 : vector<8x32xf32>
    %34 = arith.truncf %33 : vector<8x32xf32> to vector<8x32xbf16>
    %cst_18 = arith.constant dense<0.000000e+00> : vector<16x32xf32>
    %35 = tpu.matmul %2, %34, %cst_18 {dimension_numbers = #tpu.dot_dimension_numbers<[1], [0], [0], [1], [0, 0, 1, 1], [], []>} : vector<16x8xbf16>, vector<8x32xbf16>, vector<16x32xf32> -> vector<16x32xf32>
    %36 = arith.addf %35, %6 : vector<16x32xf32>
    %cst_19 = arith.constant 5.000000e-01 : f32
    %37 = vector.broadcast %cst_19 : f32 to vector<16x32xf32>
    %38 = arith.mulf %37, %36 : vector<16x32xf32>
    %cst_20 = arith.constant 4.471500e-02 : f32
    %39 = vector.broadcast %cst_20 : f32 to vector<16x32xf32>
    %40 = arith.mulf %39, %36 : vector<16x32xf32>
    %41 = arith.mulf %40, %36 : vector<16x32xf32>
    %42 = arith.mulf %41, %36 : vector<16x32xf32>
    %43 = arith.addf %36, %42 : vector<16x32xf32>
    %cst_21 = arith.constant 0.797884583 : f32
    %44 = vector.broadcast %cst_21 : f32 to vector<16x32xf32>
    %45 = arith.mulf %44, %43 : vector<16x32xf32>
    %46 = math.tanh %45 : vector<16x32xf32>
    %cst_22 = arith.constant 1.000000e+00 : f32
    %47 = vector.broadcast %cst_22 : f32 to vector<16x32xf32>
    %48 = arith.addf %47, %46 : vector<16x32xf32>
    %49 = arith.mulf %38, %48 : vector<16x32xf32>
    %50 = arith.truncf %49 : vector<16x32xf32> to vector<16x32xbf16>
    %cst_23 = arith.constant dense<0.000000e+00> : vector<8x32xf32>
    %51 = tpu.matmul %3, %50, %cst_23 {dimension_numbers = #tpu.dot_dimension_numbers<[1], [0], [0], [1], [0, 0, 1, 1], [], []>} : vector<8x16xbf16>, vector<16x32xbf16>, vector<8x32xf32> -> vector<8x32xf32>
    %cst_24 = arith.constant 5.000000e-01 : f32
    %52 = vector.broadcast %cst_24 : f32 to vector<8x32xf32>
    %53 = arith.mulf %11, %52 : vector<8x32xf32>
    %54 = arith.addf %51, %9 : vector<8x32xf32>
    %cst_25 = arith.constant 5.000000e-01 : f32
    %55 = vector.broadcast %cst_25 : f32 to vector<8x32xf32>
    %56 = arith.mulf %54, %55 : vector<8x32xf32>
    %57 = arith.addf %53, %56 : vector<8x32xf32>
    %c0_26 = arith.constant 0 : index
    %c0_27 = arith.constant 0 : index
    %58 = vector.load %arg13[%c0_26, %c0_27] : memref<8x32xf32, #tpu.memory_space<vmem>>, vector<8x32xf32>
    tpu.vector_store %arg13[%c0_26, %c0_27], %57 {strides = array<i32>} : memref<8x32xf32, #tpu.memory_space<vmem>>, vector<8x32xf32>,
    %c0_28 = arith.constant 0 : index
    %c0_29 = arith.constant 0 : index
    %59 = vector.load %arg13[%c0_28, %c0_29] : memref<8x32xf32, #tpu.memory_space<vmem>>, vector<8x32xf32>
    %cst_30 = arith.constant dense<0.000000e+00> : vector<8xf32>
    %60 = vector.multi_reduction <add>, %59, %cst_30 [1] : vector<8x32xf32> to vector<8xf32>
    %61 = vector.shape_cast %60 : vector<8xf32> to vector<8x1xf32>
    %cst_31 = arith.constant 3.200000e+01 : f32
    %62 = vector.broadcast %cst_31 : f32 to vector<8x1xf32>
    %63 = arith.divf %61, %62 : vector<8x1xf32>
    %64 = vector.broadcast %63 : vector<8x1xf32> to vector<8x32xf32>
    %65 = arith.subf %59, %64 : vector<8x32xf32>
    %66 = arith.mulf %65, %65 : vector<8x32xf32>
    %cst_32 = arith.constant dense<0.000000e+00> : vector<8xf32>
    %67 = vector.multi_reduction <add>, %66, %cst_32 [1] : vector<8x32xf32> to vector<8xf32>
    %68 = vector.shape_cast %67 : vector<8xf32> to vector<8x1xf32>
    %cst_33 = arith.constant 3.200000e+01 : f32
    %69 = vector.broadcast %cst_33 : f32 to vector<8x1xf32>
    %70 = arith.divf %68, %69 : vector<8x1xf32>
    %71 = vector.broadcast %63 : vector<8x1xf32> to vector<8x32xf32>
    %72 = arith.subf %59, %71 : vector<8x32xf32>
    %cst_34 = arith.constant 9.99999974E-6 : f32
    %73 = vector.broadcast %cst_34 : f32 to vector<8x1xf32>
    %74 = arith.addf %70, %73 : vector<8x1xf32>
    %75 = math.rsqrt %74 : vector<8x1xf32>
    %76 = vector.broadcast %75 : vector<8x1xf32> to vector<8x32xf32>
    %77 = arith.mulf %72, %76 : vector<8x32xf32>
    %78 = vector.broadcast %0 : vector<1x32xf32> to vector<8x32xf32>
    %79 = arith.mulf %77, %78 : vector<8x32xf32>
    %80 = vector.broadcast %1 : vector<1x32xf32> to vector<8x32xf32>
    %81 = arith.addf %79, %80 : vector<8x32xf32>
    %82 = arith.truncf %81 : vector<8x32xf32> to vector<8x32xbf16>
    %c0_35 = arith.constant 0 : index
    %c0_36 = arith.constant 0 : index
    %83 = vector.load %arg11[%c0_35, %c0_36] : memref<1x32xf32, #tpu.memory_space<vmem>>, vector<1x32xf32>
    %84 = vector.shape_cast %83 : vector<1x32xf32> to vector<1x32xf32>
    %85 = vector.broadcast %84 : vector<1x32xf32> to vector<8x32xf32>
    %c0_37 = arith.constant 0 : index
    %c0_38 = arith.constant 0 : index
    %86 = vector.load %arg8[%c0_37, %c0_38] : memref<32x64xbf16, #tpu.memory_space<vmem>>, vector<32x64xbf16>
    %c0_39 = arith.constant 0 : index
    %c0_40 = arith.constant 0 : index
    %87 = vector.load %arg9[%c0_39, %c0_40] : memref<1x64xf32, #tpu.memory_space<vmem>>, vector<1x64xf32>
    %c0_41 = arith.constant 0 : index
    %c0_42 = arith.constant 0 : index
    %88 = vector.load %arg10[%c0_41, %c0_42] : memref<64x32xbf16, #tpu.memory_space<vmem>>, vector<64x32xbf16>
    %cst_43 = arith.constant dense<0.000000e+00> : vector<8x64xf32>
    %89 = tpu.matmul %82, %86, %cst_43 {dimension_numbers = #tpu.dot_dimension_numbers<[1], [0], [0], [1], [0, 0, 1, 1], [], []>} : vector<8x32xbf16>, vector<32x64xbf16>, vector<8x64xf32> -> vector<8x64xf32>
    %90 = vector.broadcast %87 : vector<1x64xf32> to vector<8x64xf32>
    %91 = arith.addf %89, %90 : vector<8x64xf32>
    %cst_44 = arith.constant 5.000000e-01 : f32
    %92 = vector.broadcast %cst_44 : f32 to vector<8x64xf32>
    %93 = arith.mulf %92, %91 : vector<8x64xf32>
    %cst_45 = arith.constant 4.471500e-02 : f32
    %94 = vector.broadcast %cst_45 : f32 to vector<8x64xf32>
    %95 = arith.mulf %94, %91 : vector<8x64xf32>
    %96 = arith.mulf %95, %91 : vector<8x64xf32>
    %97 = arith.mulf %96, %91 : vector<8x64xf32>
    %98 = arith.addf %91, %97 : vector<8x64xf32>
    %cst_46 = arith.constant 0.797884583 : f32
    %99 = vector.broadcast %cst_46 : f32 to vector<8x64xf32>
    %100 = arith.mulf %99, %98 : vector<8x64xf32>
    %101 = math.tanh %100 : vector<8x64xf32>
    %cst_47 = arith.constant 1.000000e+00 : f32
    %102 = vector.broadcast %cst_47 : f32 to vector<8x64xf32>
    %103 = arith.addf %102, %101 : vector<8x64xf32>
    %104 = arith.mulf %93, %103 : vector<8x64xf32>
    %105 = arith.truncf %104 : vector<8x64xf32> to vector<8x64xbf16>
    %cst_48 = arith.constant dense<0.000000e+00> : vector<8x32xf32>
    %106 = tpu.matmul %105, %88, %cst_48 {dimension_numbers = #tpu.dot_dimension_numbers<[1], [0], [0], [1], [0, 0, 1, 1], [], []>} : vector<8x64xbf16>, vector<64x32xbf16>, vector<8x32xf32> -> vector<8x32xf32>
    %107 = arith.addf %85, %106 : vector<8x32xf32>
    %cst_49 = arith.constant 5.000000e-01 : f32
    %108 = vector.broadcast %cst_49 : f32 to vector<8x32xf32>
    %109 = arith.mulf %59, %108 : vector<8x32xf32>
    %cst_50 = arith.constant 5.000000e-01 : f32
    %110 = vector.broadcast %cst_50 : f32 to vector<8x32xf32>
    %111 = arith.mulf %107, %110 : vector<8x32xf32>
    %112 = arith.addf %109, %111 : vector<8x32xf32>
    %113 = vector.shape_cast %112 : vector<8x32xf32> to vector<1x8x32xf32>
    %c0_51 = arith.constant 0 : index
    %c0_52 = arith.constant 0 : index
    %c0_53 = arith.constant 0 : index
    %114 = vector.load %arg12[%c0_51, %c0_52, %c0_53] : memref<1x8x32xf32, #tpu.memory_space<vmem>>, vector<1x8x32xf32>
    tpu.vector_store %arg12[%c0_51, %c0_52, %c0_53], %113 {strides = array<i32>} : memref<1x8x32xf32, #tpu.memory_space<vmem>>, vector<1x8x32xf32>,
    return
  }
  func.func @transform_0(%arg0: i32) -> (i32, i32, i32) {
    %c0_i32 = arith.constant 0 : i32
    %c0_i32_0 = arith.constant 0 : i32
    %c0_i32_1 = arith.constant 0 : i32
    return %arg0, %c0_i32, %c0_i32_0 : i32, i32, i32
  }
  func.func @transform_1(%arg0: i32) -> (i32, i32) {
    %c0_i32 = arith.constant 0 : i32
    %c0_i32_0 = arith.constant 0 : i32
    %c0_i32_1 = arith.constant 0 : i32
    return %c0_i32, %c0_i32_0 : i32, i32
  }
  func.func @transform_2(%arg0: i32) -> (i32, i32) {
    %c0_i32 = arith.constant 0 : i32
    %c0_i32_0 = arith.constant 0 : i32
    %c0_i32_1 = arith.constant 0 : i32
    return %c0_i32, %c0_i32_0 : i32, i32
  }
  func.func @transform_3(%arg0: i32) -> (i32, i32) {
    %c0_i32 = arith.constant 0 : i32
    %c0_i32_0 = arith.constant 0 : i32
    %c0_i32_1 = arith.constant 0 : i32
    return %c0_i32, %c0_i32_0 : i32, i32
  }
  func.func @transform_4(%arg0: i32) -> (i32, i32) {
    %c0_i32 = arith.constant 0 : i32
    %c0_i32_0 = arith.constant 0 : i32
    %c0_i32_1 = arith.constant 0 : i32
    return %c0_i32, %c0_i32_0 : i32, i32
  }
  func.func @transform_5(%arg0: i32) -> (i32, i32) {
    %c0_i32 = arith.constant 0 : i32
    %c0_i32_0 = arith.constant 0 : i32
    %c0_i32_1 = arith.constant 0 : i32
    return %c0_i32, %c0_i32_0 : i32, i32
  }
  func.func @transform_6(%arg0: i32) -> (i32, i32) {
    %c0_i32 = arith.constant 0 : i32
    %c0_i32_0 = arith.constant 0 : i32
    %c0_i32_1 = arith.constant 0 : i32
    return %c0_i32, %c0_i32_0 : i32, i32
  }
  func.func @transform_7(%arg0: i32) -> (i32, i32) {
    %c0_i32 = arith.constant 0 : i32
    %c0_i32_0 = arith.constant 0 : i32
    %c0_i32_1 = arith.constant 0 : i32
    return %c0_i32, %c0_i32_0 : i32, i32
  }
  func.func @transform_8(%arg0: i32) -> (i32, i32) {
    %c0_i32 = arith.constant 0 : i32
    %c0_i32_0 = arith.constant 0 : i32
    %c0_i32_1 = arith.constant 0 : i32
    return %c0_i32, %c0_i32_0 : i32, i32
  }
  func.func @transform_9(%arg0: i32) -> (i32, i32) {
    %c0_i32 = arith.constant 0 : i32
    %c0_i32_0 = arith.constant 0 : i32
    %c0_i32_1 = arith.constant 0 : i32
    return %c0_i32, %c0_i32_0 : i32, i32
  }
  func.func @transform_10(%arg0: i32) -> (i32, i32) {
    %c0_i32 = arith.constant 0 : i32
    %c0_i32_0 = arith.constant 0 : i32
    %c0_i32_1 = arith.constant 0 : i32
    return %c0_i32, %c0_i32_0 : i32, i32
  }
  func.func @transform_11(%arg0: i32) -> (i32, i32, i32) {
    %c0_i32 = arith.constant 0 : i32
    %c0_i32_0 = arith.constant 0 : i32
    %c0_i32_1 = arith.constant 0 : i32
    return %arg0, %c0_i32, %c0_i32_0 : i32, i32, i32
  }
}

module attributes {stable_mosaic.version = 11 : i64} {
  func.func @mixer_kernel(%arg0: i32, %arg1: memref<1x8x32xf32, #tpu.memory_space<vmem>>, %arg2: memref<1x32xf32, #tpu.memory_space<vmem>>, %arg3: memref<1x32xf32, #tpu.memory_space<vmem>>, %arg4: memref<16x8xbf16, #tpu.memory_space<vmem>>, %arg5: memref<16x1xf32, #tpu.memory_space<vmem>>, %arg6: memref<8x16xbf16, #tpu.memory_space<vmem>>, %arg7: memref<8x1xf32, #tpu.memory_space<vmem>>, %arg8: memref<32x64xbf16, #tpu.memory_space<vmem>>, %arg9: memref<1x64xf32, #tpu.memory_space<vmem>>, %arg10: memref<64x32xbf16, #tpu.memory_space<vmem>>, %arg11: memref<1x32xf32, #tpu.memory_space<vmem>>, %arg12: memref<1x8x32xf32, #tpu.memory_space<vmem>>, %arg13: memref<8x32xf32, #tpu.memory_space<vmem>>) attributes {dimension_semantics = [#tpu.dimension_semantics<parallel>], iteration_bounds = array<i64: 2>, scalar_prefetch = 0 : i64, scratch_operands = 1 : i64, tpu.core_type = #tpu.core_type<tc>, window_params = [{transform_indices = @transform_0, window_bounds = array<i64: 1, 8, 32>}, {pipeline_mode = #tpu.pipeline_mode<synchronous>, transform_indices = @transform_1, window_bounds = array<i64: 1, 32>}, {pipeline_mode = #tpu.pipeline_mode<synchronous>, transform_indices = @transform_2, window_bounds = array<i64: 1, 32>}, {pipeline_mode = #tpu.pipeline_mode<synchronous>, transform_indices = @transform_3, window_bounds = array<i64: 16, 8>}, {pipeline_mode = #tpu.pipeline_mode<synchronous>, transform_indices = @transform_4, window_bounds = array<i64: 16, 1>}, {pipeline_mode = #tpu.pipeline_mode<synchronous>, transform_indices = @transform_5, window_bounds = array<i64: 8, 16>}, {pipeline_mode = #tpu.pipeline_mode<synchronous>, transform_indices = @transform_6, window_bounds = array<i64: 8, 1>}, {pipeline_mode = #tpu.pipeline_mode<synchronous>, transform_indices = @transform_7, window_bounds = array<i64: 32, 64>}, {pipeline_mode = #tpu.pipeline_mode<synchronous>, transform_indices = @transform_8, window_bounds = array<i64: 1, 64>}, {pipeline_mode = #tpu.pipeline_mode<synchronous>, transform_indices = @transform_9, window_bounds = array<i64: 64, 32>}, {pipeline_mode = #tpu.pipeline_mode<synchronous>, transform_indices = @transform_10, window_bounds = array<i64: 1, 32>}, {transform_indices = @transform_11, window_bounds = array<i64: 1, 8, 32>}]} {
    %c0 = arith.constant 0 : index
    %c0_0 = arith.constant 0 : index
    %0 = vector.load %arg2[%c0, %c0_0] : memref<1x32xf32, #tpu.memory_space<vmem>>, vector<1x32xf32>
    %c0_1 = arith.constant 0 : index
    %c0_2 = arith.constant 0 : index
    %1 = vector.load %arg3[%c0_1, %c0_2] : memref<1x32xf32, #tpu.memory_space<vmem>>, vector<1x32xf32>
    %c0_3 = arith.constant 0 : index
    %c0_4 = arith.constant 0 : index
    %2 = vector.load %arg4[%c0_3, %c0_4] : memref<16x8xbf16, #tpu.memory_space<vmem>>, vector<16x8xbf16>
    %c0_5 = arith.constant 0 : index
    %c0_6 = arith.constant 0 : index
    %3 = vector.load %arg6[%c0_5, %c0_6] : memref<8x16xbf16, #tpu.memory_space<vmem>>, vector<8x16xbf16>
    %c0_7 = arith.constant 0 : index
    %c0_8 = arith.constant 0 : index
    %4 = vector.load %arg5[%c0_7, %c0_8] : memref<16x1xf32, #tpu.memory_space<vmem>>, vector<16x1xf32>
    %5 = vector.shape_cast %4 : vector<16x1xf32> to vector<16x1xf32>
    %6 = vector.broadcast %5 : vector<16x1xf32> to vector<16x32xf32>
    %c0_9 = arith.constant 0 : index
    %c0_10 = arith.constant 0 : index
    %7 = vector.load %arg7[%c0_9, %c0_10] : memref<8x1xf32, #tpu.memory_space<vmem>>, vector<8x1xf32>
    %8 = vector.shape_cast %7 : vector<8x1xf32> to vector<8x1xf32>
    %9 = vector.broadcast %8 : vector<8x1xf32> to vector<8x32xf32>
    %c0_11 = arith.constant 0 : index
    %c0_12 = arith.constant 0 : index
    %c0_13 = arith.constant 0 : index
    %10 = vector.load %arg1[%c0_11, %c0_12, %c0_13] : memref<1x8x32xf32, #tpu.memory_space<vmem>>, vector<1x8x32xf32>
    %11 = vector.shape_cast %10 : vector<1x8x32xf32> to vector<8x32xf32>
    %cst = arith.constant dense<0.000000e+00> : vector<8xf32>
    %12 = vector.multi_reduction <add>, %11, %cst [1] : vector<8x32xf32> to vector<8xf32>
    %13 = vector.shape_cast %12 : vector<8xf32> to vector<8x1xf32>
    %cst_14 = arith.constant 3.200000e+01 : f32
    %14 = vector.broadcast %cst_14 : f32 to vector<8x1xf32>
    %15 = arith.divf %13, %14 : vector<8x1xf32>
    %16 = vector.broadcast %15 : vector<8x1xf32> to vector<8x32xf32>
    %17 = arith.subf %11, %16 : vector<8x32xf32>
    %18 = arith.mulf %17, %17 : vector<8x32xf32>
    %cst_15 = arith.constant dense<0.000000e+00> : vector<8xf32>
    %19 = vector.multi_reduction <add>, %18, %cst_15 [1] : vector<8x32xf32> to vector<8xf32>
    %20 = vector.shape_cast %19 : vector<8xf32> to vector<8x1xf32>
    %cst_16 = arith.constant 3.200000e+01 : f32
    %21 = vector.broadcast %cst_16 : f32 to vector<8x1xf32>
    %22 = arith.divf %20, %21 : vector<8x1xf32>
    %23 = vector.broadcast %15 : vector<8x1xf32> to vector<8x32xf32>
    %24 = arith.subf %11, %23 : vector<8x32xf32>
    %cst_17 = arith.constant 9.99999974E-6 : f32
    %25 = vector.broadcast %cst_17 : f32 to vector<8x1xf32>
    %26 = arith.addf %22, %25 : vector<8x1xf32>
    %27 = math.rsqrt %26 : vector<8x1xf32>
    %28 = vector.broadcast %27 : vector<8x1xf32> to vector<8x32xf32>
    %29 = arith.mulf %24, %28 : vector<8x32xf32>
    %30 = vector.broadcast %0 : vector<1x32xf32> to vector<8x32xf32>
    %31 = arith.mulf %29, %30 : vector<8x32xf32>
    %32 = vector.broadcast %1 : vector<1x32xf32> to vector<8x32xf32>
    %33 = arith.addf %31, %32 : vector<8x32xf32>
    %34 = arith.truncf %33 : vector<8x32xf32> to vector<8x32xbf16>
    %cst_18 = arith.constant dense<0.000000e+00> : vector<16x32xf32>
    %35 = tpu.matmul %2, %34, %cst_18 {dimension_numbers = #tpu.dot_dimension_numbers<[1], [0], [0], [1], [0, 0, 1, 1], [], []>} : vector<16x8xbf16>, vector<8x32xbf16>, vector<16x32xf32> -> vector<16x32xf32>
    %36 = arith.addf %35, %6 : vector<16x32xf32>
    %cst_19 = arith.constant 5.000000e-01 : f32
    %37 = vector.broadcast %cst_19 : f32 to vector<16x32xf32>
    %38 = arith.mulf %37, %36 : vector<16x32xf32>
    %cst_20 = arith.constant 4.471500e-02 : f32
    %39 = vector.broadcast %cst_20 : f32 to vector<16x32xf32>
    %40 = arith.mulf %39, %36 : vector<16x32xf32>
    %41 = arith.mulf %40, %36 : vector<16x32xf32>
    %42 = arith.mulf %41, %36 : vector<16x32xf32>
    %43 = arith.addf %36, %42 : vector<16x32xf32>
    %cst_21 = arith.constant 0.797884583 : f32
    %44 = vector.broadcast %cst_21 : f32 to vector<16x32xf32>
    %45 = arith.mulf %44, %43 : vector<16x32xf32>
    %46 = math.tanh %45 : vector<16x32xf32>
    %cst_22 = arith.constant 1.000000e+00 : f32
    %47 = vector.broadcast %cst_22 : f32 to vector<16x32xf32>
    %48 = arith.addf %47, %46 : vector<16x32xf32>
    %49 = arith.mulf %38, %48 : vector<16x32xf32>
    %50 = arith.truncf %49 : vector<16x32xf32> to vector<16x32xbf16>
    %cst_23 = arith.constant dense<0.000000e+00> : vector<8x32xf32>
    %51 = tpu.matmul %3, %50, %cst_23 {dimension_numbers = #tpu.dot_dimension_numbers<[1], [0], [0], [1], [0, 0, 1, 1], [], []>} : vector<8x16xbf16>, vector<16x32xbf16>, vector<8x32xf32> -> vector<8x32xf32>
    %cst_24 = arith.constant 5.000000e-01 : f32
    %52 = vector.broadcast %cst_24 : f32 to vector<8x32xf32>
    %53 = arith.mulf %11, %52 : vector<8x32xf32>
    %54 = arith.addf %51, %9 : vector<8x32xf32>
    %cst_25 = arith.constant 5.000000e-01 : f32
    %55 = vector.broadcast %cst_25 : f32 to vector<8x32xf32>
    %56 = arith.mulf %54, %55 : vector<8x32xf32>
    %57 = arith.addf %53, %56 : vector<8x32xf32>
    %c0_26 = arith.constant 0 : index
    %c0_27 = arith.constant 0 : index
    %58 = vector.load %arg13[%c0_26, %c0_27] : memref<8x32xf32, #tpu.memory_space<vmem>>, vector<8x32xf32>
    tpu.vector_store %arg13[%c0_26, %c0_27], %57 {strides = array<i32>} : memref<8x32xf32, #tpu.memory_space<vmem>>, vector<8x32xf32>,
    %c0_28 = arith.constant 0 : index
    %c0_29 = arith.constant 0 : index
    %59 = vector.load %arg13[%c0_28, %c0_29] : memref<8x32xf32, #tpu.memory_space<vmem>>, vector<8x32xf32>
    %cst_30 = arith.constant dense<0.000000e+00> : vector<8xf32>
    %60 = vector.multi_reduction <add>, %59, %cst_30 [1] : vector<8x32xf32> to vector<8xf32>
    %61 = vector.shape_cast %60 : vector<8xf32> to vector<8x1xf32>
    %cst_31 = arith.constant 3.200000e+01 : f32
    %62 = vector.broadcast %cst_31 : f32 to vector<8x1xf32>
    %63 = arith.divf %61, %62 : vector<8x1xf32>
    %64 = vector.broadcast %63 : vector<8x1xf32> to vector<8x32xf32>
    %65 = arith.subf %59, %64 : vector<8x32xf32>
    %66 = arith.mulf %65, %65 : vector<8x32xf32>
    %cst_32 = arith.constant dense<0.000000e+00> : vector<8xf32>
    %67 = vector.multi_reduction <add>, %66, %cst_32 [1] : vector<8x32xf32> to vector<8xf32>
    %68 = vector.shape_cast %67 : vector<8xf32> to vector<8x1xf32>
    %cst_33 = arith.constant 3.200000e+01 : f32
    %69 = vector.broadcast %cst_33 : f32 to vector<8x1xf32>
    %70 = arith.divf %68, %69 : vector<8x1xf32>
    %71 = vector.broadcast %63 : vector<8x1xf32> to vector<8x32xf32>
    %72 = arith.subf %59, %71 : vector<8x32xf32>
    %cst_34 = arith.constant 9.99999974E-6 : f32
    %73 = vector.broadcast %cst_34 : f32 to vector<8x1xf32>
    %74 = arith.addf %70, %73 : vector<8x1xf32>
    %75 = math.rsqrt %74 : vector<8x1xf32>
    %76 = vector.broadcast %75 : vector<8x1xf32> to vector<8x32xf32>
    %77 = arith.mulf %72, %76 : vector<8x32xf32>
    %78 = vector.broadcast %0 : vector<1x32xf32> to vector<8x32xf32>
    %79 = arith.mulf %77, %78 : vector<8x32xf32>
    %80 = vector.broadcast %1 : vector<1x32xf32> to vector<8x32xf32>
    %81 = arith.addf %79, %80 : vector<8x32xf32>
    %82 = arith.truncf %81 : vector<8x32xf32> to vector<8x32xbf16>
    %c0_35 = arith.constant 0 : index
    %c0_36 = arith.constant 0 : index
    %83 = vector.load %arg11[%c0_35, %c0_36] : memref<1x32xf32, #tpu.memory_space<vmem>>, vector<1x32xf32>
    %84 = vector.shape_cast %83 : vector<1x32xf32> to vector<1x32xf32>
    %85 = vector.broadcast %84 : vector<1x32xf32> to vector<8x32xf32>
    %c0_37 = arith.constant 0 : index
    %c0_38 = arith.constant 0 : index
    %86 = vector.load %arg8[%c0_37, %c0_38] : memref<32x64xbf16, #tpu.memory_space<vmem>>, vector<32x64xbf16>
    %c0_39 = arith.constant 0 : index
    %c0_40 = arith.constant 0 : index
    %87 = vector.load %arg9[%c0_39, %c0_40] : memref<1x64xf32, #tpu.memory_space<vmem>>, vector<1x64xf32>
    %c0_41 = arith.constant 0 : index
    %c0_42 = arith.constant 0 : index
    %88 = vector.load %arg10[%c0_41, %c0_42] : memref<64x32xbf16, #tpu.memory_space<vmem>>, vector<64x32xbf16>
    %cst_43 = arith.constant dense<0.000000e+00> : vector<8x64xf32>
    %89 = tpu.matmul %82, %86, %cst_43 {dimension_numbers = #tpu.dot_dimension_numbers<[1], [0], [0], [1], [0, 0, 1, 1], [], []>} : vector<8x32xbf16>, vector<32x64xbf16>, vector<8x64xf32> -> vector<8x64xf32>
    %90 = vector.broadcast %87 : vector<1x64xf32> to vector<8x64xf32>
    %91 = arith.addf %89, %90 : vector<8x64xf32>
    %cst_44 = arith.constant 5.000000e-01 : f32
    %92 = vector.broadcast %cst_44 : f32 to vector<8x64xf32>
    %93 = arith.mulf %92, %91 : vector<8x64xf32>
    %cst_45 = arith.constant 4.471500e-02 : f32
    %94 = vector.broadcast %cst_45 : f32 to vector<8x64xf32>
    %95 = arith.mulf %94, %91 : vector<8x64xf32>
    %96 = arith.mulf %95, %91 : vector<8x64xf32>
    %97 = arith.mulf %96, %91 : vector<8x64xf32>
    %98 = arith.addf %91, %97 : vector<8x64xf32>
    %cst_46 = arith.constant 0.797884583 : f32
    %99 = vector.broadcast %cst_46 : f32 to vector<8x64xf32>
    %100 = arith.mulf %99, %98 : vector<8x64xf32>
    %101 = math.tanh %100 : vector<8x64xf32>
    %cst_47 = arith.constant 1.000000e+00 : f32
    %102 = vector.broadcast %cst_47 : f32 to vector<8x64xf32>
    %103 = arith.addf %102, %101 : vector<8x64xf32>
    %104 = arith.mulf %93, %103 : vector<8x64xf32>
    %105 = arith.truncf %104 : vector<8x64xf32> to vector<8x64xbf16>
    %cst_48 = arith.constant dense<0.000000e+00> : vector<8x32xf32>
    %106 = tpu.matmul %105, %88, %cst_48 {dimension_numbers = #tpu.dot_dimension_numbers<[1], [0], [0], [1], [0, 0, 1, 1], [], []>} : vector<8x64xbf16>, vector<64x32xbf16>, vector<8x32xf32> -> vector<8x32xf32>
    %107 = arith.addf %85, %106 : vector<8x32xf32>
    %cst_49 = arith.constant 5.000000e-01 : f32
    %108 = vector.broadcast %cst_49 : f32 to vector<8x32xf32>
    %109 = arith.mulf %59, %108 : vector<8x32xf32>
    %cst_50 = arith.constant 5.000000e-01 : f32
    %110 = vector.broadcast %cst_50 : f32 to vector<8x32xf32>
    %111 = arith.mulf %107, %110 : vector<8x32xf32>
    %112 = arith.addf %109, %111 : vector<8x32xf32>
    %113 = vector.shape_cast %112 : vector<8x32xf32> to vector<1x8x32xf32>
    %c0_51 = arith.constant 0 : index
    %c0_52 = arith.constant 0 : index
    %c0_53 = arith.constant 0 : index
    %114 = vector.load %arg12[%c0_51, %c0_52, %c0_53] : memref<1x8x32xf32, #tpu.memory_space<vmem>>, vector<1x8x32xf32>
    tpu.vector_store %arg12[%c0_51, %c0_52, %c0_53], %113 {strides = array<i32>} : memref<1x8x32xf32, #tpu.memory_space<vmem>>, vector<1x8x32xf32>,
    return
  }
  func.func @transform_0(%arg0: i32) -> (i32, i32, i32) {
    %c0_i32 = arith.constant 0 : i32
    %c0_i32_0 = arith.constant 0 : i32
    %c0_i32_1 = arith.constant 0 : i32
    return %arg0, %c0_i32, %c0_i32_0 : i32, i32, i32
  }
  func.func @transform_1(%arg0: i32) -> (i32, i32) {
    %c0_i32 = arith.constant 0 : i32
    %c0_i32_0 = arith.constant 0 : i32
    %c0_i32_1 = arith.constant 0 : i32
    return %c0_i32, %c0_i32_0 : i32, i32
  }
  func.func @transform_2(%arg0: i32) -> (i32, i32) {
    %c0_i32 = arith.constant 0 : i32
    %c0_i32_0 = arith.constant 0 : i32
    %c0_i32_1 = arith.constant 0 : i32
    return %c0_i32, %c0_i32_0 : i32, i32
  }
  func.func @transform_3(%arg0: i32) -> (i32, i32) {
    %c0_i32 = arith.constant 0 : i32
    %c0_i32_0 = arith.constant 0 : i32
    %c0_i32_1 = arith.constant 0 : i32
    return %c0_i32, %c0_i32_0 : i32, i32
  }
  func.func @transform_4(%arg0: i32) -> (i32, i32) {
    %c0_i32 = arith.constant 0 : i32
    %c0_i32_0 = arith.constant 0 : i32
    %c0_i32_1 = arith.constant 0 : i32
    return %c0_i32, %c0_i32_0 : i32, i32
  }
  func.func @transform_5(%arg0: i32) -> (i32, i32) {
    %c0_i32 = arith.constant 0 : i32
    %c0_i32_0 = arith.constant 0 : i32
    %c0_i32_1 = arith.constant 0 : i32
    return %c0_i32, %c0_i32_0 : i32, i32
  }
  func.func @transform_6(%arg0: i32) -> (i32, i32) {
    %c0_i32 = arith.constant 0 : i32
    %c0_i32_0 = arith.constant 0 : i32
    %c0_i32_1 = arith.constant 0 : i32
    return %c0_i32, %c0_i32_0 : i32, i32
  }
  func.func @transform_7(%arg0: i32) -> (i32, i32) {
    %c0_i32 = arith.constant 0 : i32
    %c0_i32_0 = arith.constant 0 : i32
    %c0_i32_1 = arith.constant 0 : i32
    return %c0_i32, %c0_i32_0 : i32, i32
  }
  func.func @transform_8(%arg0: i32) -> (i32, i32) {
    %c0_i32 = arith.constant 0 : i32
    %c0_i32_0 = arith.constant 0 : i32
    %c0_i32_1 = arith.constant 0 : i32
    return %c0_i32, %c0_i32_0 : i32, i32
  }
  func.func @transform_9(%arg0: i32) -> (i32, i32) {
    %c0_i32 = arith.constant 0 : i32
    %c0_i32_0 = arith.constant 0 : i32
    %c0_i32_1 = arith.constant 0 : i32
    return %c0_i32, %c0_i32_0 : i32, i32
  }
  func.func @transform_10(%arg0: i32) -> (i32, i32) {
    %c0_i32 = arith.constant 0 : i32
    %c0_i32_0 = arith.constant 0 : i32
    %c0_i32_1 = arith.constant 0 : i32
    return %c0_i32, %c0_i32_0 : i32, i32
  }
  func.func @transform_11(%arg0: i32) -> (i32, i32, i32) {
    %c0_i32 = arith.constant 0 : i32
    %c0_i32_0 = arith.constant 0 : i32
    %c0_i32_1 = arith.constant 0 : i32
    return %arg0, %c0_i32, %c0_i32_0 : i32, i32, i32
  }
}

</mosaic_0001>

<bundles_post_ra>
// kernel: tpu_custom_call.1
= control target key start
LH: loop header
LB: loop body
LE: loop exit
PB: predicated region body
PF: predicated region fallthrough
CT: control target
= control target key end

     0   :  { %s1256_s0 = inlined_call_operand.vmem [shape: f32[2,8,32], index: 0, kind: input, shape index: {}]   ;;  %s1257_s1 = inlined_call_operand.vmem [shape: f32[1,32], index: 1, kind: input, shape index: {}]   ;;  %s1258_s2 = inlined_call_operand.vmem [shape: f32[1,32], index: 2, kind: input, shape index: {}]   ;;  %s1259_s3 = inlined_call_operand.vmem [shape: bf16[16,8], index: 3, kind: input, shape index: {}]   ;;  %s1260_s4 = inlined_call_operand.vmem [shape: f32[16,1], index: 4, kind: input, shape index: {}]   ;;  %s1261_s5 = inlined_call_operand.vmem [shape: bf16[8,16], index: 5, kind: input, shape index: {}]   ;;  %s1262_s6 = inlined_call_operand.vmem [shape: f32[8,1], index: 6, kind: input, shape index: {}]   ;;  %s1263_s7 = inlined_call_operand.vmem [shape: bf16[32,64], index: 7, kind: input, shape index: {}]   ;;  %s1264_s8 = inlined_call_operand.vmem [shape: f32[1,64], index: 8, kind: input, shape index: {}]   ;;  %s1265_s9 = inlined_call_operand.vmem [shape: bf16[64,32], index: 9, kind: input, shape index: {}]   ;;  %s1266_s10 = inlined_call_operand.vmem [shape: f32[1,32], index: 10, kind: input, shape index: {}]   ;;  %s1267_s11 = inlined_call_operand.hbm [shape: f32[2,8,32], index: 11, kind: output, shape index: {}]  }
   0x1   :  { %1268 = sst [smem:[#allocation6_spill]] %s1256_s0 }
   0x2   :  { %16 = vsyncpa [#allocation4], 0 }
   0x3   :  { %18 = vsyncpa [#allocation4 + $0x1], 0  ;;  %s1070_s17 = smov 0   ;;  %s1072_s18 = smov 0  }
   0x4   :  { %s1074_s19 = smov 0   ;;  %s1076_s20 = smov 0  }
   0x5 LB: > { %s1091_s21 = sadd.s32 4294967295, %s1004_s20   ;;  %s812_s22 = sadd.s32 4294967294, %s1004_s20   ;;  %s1004_s20 = sphi %s1076_s20, %s1275_s20   ;;  %s1000_s19 = sphi %s1074_s19, %s1274_s19   ;;  %s996_s18 = sphi %s1072_s18, %s1273_s18   ;;  %s992_s17 = sphi %s1070_s17, %s1272_s17  }
   0x6   : > { %s1095_s23 = sadd.s32 1, %s1004_s20   ;;  %s267_s24 = sadd.s32 1, %s1000_s19 }
   0x7   : > { %s264_s25 = ssub.s32 %s1004_s20, %s1095_s23  ;;  %p277_p0 = scmp.ne.s32.totalorder %s1000_s19, %s996_s18 }
   0x8   : > { %p265_p1 = scmp.eq.s32.totalorder %s264_s25, 0  ;;  %p278_p2 = scmp.eq.s32.totalorder %s1091_s21, 1 }
   0x9   : > { %p283_p3 = scmp.ne.s32.totalorder %s996_s18, %s992_s17  ;;  %p284_p4 = scmp.eq.s32.totalorder %s812_s22, 1 }
   0xa   : > { %s1106_s26 = scalar_select %p265_p1, %s1000_s19, %s267_s24  }
   0xb   : > { %p1108_p5 = por %p278_p2, %p277_p0  ;;  %p1112_p6 = por %p284_p4, %p283_p3 }
   0xc   : > { %p815_p7 = scmp.ge.s32.totalorder %s1004_s20, 1  ;;  %p339_p8 = scmp.lt.s32.totalorder %s1004_s20, 3 }
   0xe   : > { %p340_p9 = pnand %p815_p7, %p339_p8 }
   0xf   : > { %p378_p10 = scmp.lt.s32.totalorder (!%p340_p9), %s1091_s21, 1  ;;  %vm407_vm0 = vcmask (!%p340_p9), 261120   ;;  %s1271_s0 = sld [smem:[#allocation6_spill]] (!%p340_p9)  ;;  %v1006_v7 = vmov (!%p340_p9), 0.0   ;;  %vm1007_vm1 = vmmov (!%p340_p9), 0   ;;  %v388_v8 = vld [vmem:[%s1260_s4] sm:$0xff] (!%p340_p9) }
  0x10   : > { %343 = sbr.rel (%p340_p9) target bundleno = 1607 (0x647), region = 64  ;;  %849 = vmatprep.subr.bf16.mxu0 (!%p340_p9), %v1006_v7  ;;  %855 = vmatprep.subr.bf16.mxu1 (!%p340_p9), %v1006_v7  ;;  %v1008_v9 = vmov (!%p340_p9), 0   ;;  %v389_v10 = vld [vmem:[%s1260_s4 + $0x8] sm:$0xff] (!%p340_p9)  ;;  %v1144_v15 = vld [vmem:[%s1257_s1] ss:$0 sm:$0xff] (!%p340_p9)  ;;  %vm446_vm2 = vcmask (!%p340_p9), 1043456  }
  0x11   : > { %851 = vmatprep.mubr.msk.bf16.mxu0 (!%p340_p9), %vm1007_vm1, %v1006_v7  ;;  %857 = vmatprep.mubr.msk.bf16.mxu1 (!%p340_p9), %vm1007_vm1, %v1006_v7  ;;  %v1149_v17 = vld [vmem:[%s1258_s2] ss:$0 sm:$0xff] (!%p340_p9)  ;;  %vm442_vm3 = vcmask (!%p340_p9), 64512   ;;  %vm511_vm4 = vcmask (!%p340_p9), 130048   ;;  %vm690_vm5 = vcmask (!%p340_p9), 523264   ;;  %s375_s13 = sand.u32 (!%p340_p9), 1, %s996_s18  }
  0x12   : > { %923 = vset.pattern.permute.xlu1 (!%p340_p9), %v1008_v9  ;;  %924 = vset.pattern.permute.xlu0 (!%p340_p9), %v1008_v9  ;;  %v925_v22 = vld [vmem:[%s1259_s3] sm:$0xff] (!%p340_p9)   ;;  %s834_s22 = sshll.u32 (!%p340_p9), %s1091_s21, 7  ;;  %s1009_s15 = smov (!%p340_p9), [#allocation3]  }
  0x13   : > { %392 = vperm.xlu1 (!%p340_p9), %923, %v388_v8   ;;  %v400_v23 = vld [vmem:[%s1262_s6] sm:$0xff] (!%p340_p9)  ;;  %s1213_s12 = scalar_lea.hbm (!%p340_p9), %s1267_s11, %s834_s22  ;;  %s946_s16 = sshll.u32 (!%p340_p9), %s1009_s15, 4  ;;  %s947_s16 = int_to_ptr.vmem [resolvable:$false] %s946_s16 }
  0x14   : > { %v387_v51 = vld [vmem:[%s1261_s5] sm:$0xf] (!%p340_p9) }
  0x17   : > { %s379_s29 = scalar_select %p378_p10, %s1091_s21, 1  ;;  %397 = vperm.xlu1 %923, %v389_v10  }
  0x18   : > { %s740_s21 = scalar_lea.sflag [#allocation4], %s375_s13 }
  0x19   : > { %s817_s30 = sshll.u32 %s379_s29, 3 }
  0x1a   : > { %s381_s14 = scalar_lea.vmem %s1271_s0, %s817_s30  ;;  %s948_s0 = scalar_lea.vmem %s947_s16, 256 }
  0x1b   : > { %v1123_v0 = vld [vmem:[%s381_s14] sm:$0xff]  ;;  %s816_s14 = sshll.u32 %s375_s13, 3 }
  0x1c   : > { %v408_v1 = vsel %vm407_vm0, %v1123_v0, 0.0  ;;  %v510_v54 = vmul.f32 0.5, %v1123_v0  ;;  %s377_s24 = scalar_lea.vmem [#allocation3], %s816_s14 }
  0x1d   : > { %409 = vadd.xlane.f32.xlu0 %v408_v1  ;;  %s753_s25 = sshll.u32 %s377_s24, 4  ;;  %s1215_s25 = int_to_ptr.vmem [resolvable:$true] %s753_s25 }
  0x1e   : > { %s942_s14 = scalar_lea.vmem %s1215_s25, 128  ;;  %p949_p0 = scmp.lt.s32.totalorder %s1215_s25, %s947_s16 }
  0x1f   : > { %p943_p11 = scmp.ne.s32.totalorder %s1215_s25, %s942_s14  ;;  %p950_p1 = scmp.lt.s32.totalorder %s948_s0, %s942_s14 }
  0x21   : > { %p944_p12 = pnand %p943_p11, %p1108_p5  ;;  %p951_p2 = por %p950_p1, %p949_p0 }
  0x23   : > { %p945_p13 = pneg %p944_p12 }
  0x25   : > { %p952_p3 = pnand %p951_p2, %p945_p13 }
  0x92   : > { %v393_v24 = vpop.permute.xlu1 %392 }
  0x96   : > { %v398_v28 = vpop.permute.xlu1 %397 }
  0xaa   : > { %v410_v2 = vpop.xlane.xlu0 %409 }
  0xab   : > { %v412_v3 = vmul.f32 0.03125, %v410_v2 }
  0xad   : > { %v413_v4 = vsub.f32 %v1123_v0, %v412_v3 }
  0xaf   : > { %v414_v5 = vmul.f32 %v413_v4, %v413_v4 }
  0xb1   : > { %v415_v6 = vsel %vm407_vm0, %v414_v5, 0.0  ;;  %v927_v5 = vld [vmem:[%s1263_s7 + $0x8] sm:$0xff]  }
  0xb2   : > { %416 = vadd.xlane.f32.xlu0 %v415_v6 }
  0xc8   : > { %403 = vperm.xlu0 %924, %v400_v23  }
 0x13f   : > { %v417_v11 = vpop.xlane.xlu0 %416 }
 0x140   : > { %v418_v12 = vmul.f32 0.03125, %v417_v11 }
 0x142   : > { %v419_v13 = vadd.f32 1e-05, %v418_v12 }
 0x144   : > { %932 = vrsqrt.f32 %v419_v13 }
 0x147   : > { %v404_v52 = vpop.permute.xlu0 %403 }
 0x14e   : > { %v933_v14 = vpop.eup %932 }
 0x14f   : > { %v421_v16 = vmul.f32 %v933_v14, %v413_v4  ;;  %v926_v4 = vld [vmem:[%s1263_s7] sm:$0xff]  }
 0x151   : > { %v428_v18 = vmul.f32 %v1144_v15, %v421_v16  ;;  %v928_v16 = vld [vmem:[%s1265_s9] sm:$0xff]  }
 0x153   : > { %v435_v19 = vadd.f32 %v1149_v17, %v428_v18  ;;  %v929_v18 = vld [vmem:[%s1265_s9 + $0x8] sm:$0xff]  }
 0x155   : > { %v436_v20 = vpack.c.bf16 %v435_v19, %v435_v19  ;;  %v824_v19 = vld [vmem:[%s1264_s8] ss:$0 sm:$0xff] }
 0x157   : > { %v448_v21 = vsel %vm446_vm2, %v436_v20, 0 }
 0x158   : > { %850 = vmatpush3.bf16.msra.mxu0 %v448_v21 }
 0x159   : > { %861 = vmatprep.subr.bf16.mxu0 %v1006_v7 }
 0x15b   : > { %852 = vmatmul.mubr.msk.bf16.vlgmr.msra.gmra.mrb[0].mxu0 %vm442_vm3, %v925_v22 }
 0x15c   : > { %865 = vmatprep.mubr.msk.bf16.mxu0 %vm1007_vm1, %v1006_v7  ;;  %862 = vmatpush3.bf16.msra.mxu0 %v926_v4 }
 0x15d   : > { %863 = vmatprep.subr.bf16.mxu0 %v1006_v7 }
 0x160   : > { %864 = vmatpush3.bf16.msra.mxu0 %v927_v5 }
 0x22e   : > { %v484_v25 = vpop.f32.mrb[0].mxu0 }
 0x22f   : > { %v485_v26 = vadd.f32 %v484_v25, %v393_v24  ;;  %v853_v27 = vpop.f32.mrb[1].mxu0 }
 0x230   : > { %v487_v29 = vpop.f32.mrb[2].mxu0 }
 0x231   : > { %v493_v30 = vmul.f32 0.044715, %v485_v26  ;;  %v488_v31 = vadd.f32 %v487_v29, %v398_v28  ;;  %v854_v32 = vpop.f32.mrb[3].mxu0  ;;  %v491_v45 = vmul.f32 0.5, %v485_v26 }
 0x233   : > { %v495_v33 = vmul.f32 %v493_v30, %v485_v26  ;;  %v494_v34 = vmul.f32 0.044715, %v488_v31  ;;  %v492_v46 = vmul.f32 0.5, %v488_v31 }
 0x235   : > { %v496_v35 = vmul.f32 %v494_v34, %v488_v31  ;;  %v497_v36 = vmul.f32 %v495_v33, %v485_v26  ;;  %v823_v34 = vld [vmem:[%s1266_s10] ss:$0 sm:$0xff] }
 0x237   : > { %v498_v37 = vmul.f32 %v496_v35, %v488_v31  ;;  %v499_v38 = vadd.f32 %v497_v36, %v485_v26 }
 0x239   : > { %v500_v39 = vadd.f32 %v498_v37, %v488_v31  ;;  %v501_v40 = vmul.f32 0.7978846, %v499_v38 }
 0x23b   : > { %v502_v41 = vmul.f32 0.7978846, %v500_v39  ;;  %934 = vtanh.f32 %v501_v40 }
 0x23d   : > { %936 = vtanh.f32 %v502_v41 }
 0x245   : > { %v935_v42 = vpop.eup %934 }
 0x246   : > { %v505_v43 = vadd.f32 1.0, %v935_v42 }
 0x247   : > { %v937_v44 = vpop.eup %936 }
 0x248   : > { %v506_v47 = vadd.f32 1.0, %v937_v44  ;;  %v507_v48 = vmul.f32 %v505_v43, %v491_v45 }
 0x24a   : > { %v508_v49 = vmul.f32 %v506_v47, %v492_v46 }
 0x24c   : > { %v509_v50 = vpack.c.bf16 %v508_v49, %v507_v48 }
 0x24e   : > { %856 = vmatpush3.bf16.msra.mxu1 %v509_v50 }
 0x24f   : > { %869 = vmatprep.subr.bf16.mxu1 %v1006_v7 }
 0x251   : > { %858 = vmatmul.mubr.msk.bf16.vlgmr.msra.gmra.mrb[0].mxu1 %vm511_vm4, %v387_v51 }
 0x252   : > { %877 = vmatprep.mubr.msk.bf16.mxu1 %vm1007_vm1, %v1006_v7  ;;  %870 = vmatpush3.bf16.msra.mxu1 %v928_v16 }
 0x253   : > { %871 = vmatprep.subr.bf16.mxu1 %v1006_v7 }
 0x256   : > { %872 = vmatpush3.bf16.msra.mxu1 %v929_v18 }
 0x257   : > { %873 = vmatprep.subr.bf16.mxu1 %v1006_v7 }
 0x324   : > { %v549_v53 = vpop.f32.mrb[0].mxu1 }
 0x325   : > { %v550_v55 = vadd.f32 %v549_v53, %v404_v52  ;;  %v859_v56 = vpop.f32.mrb[1].mxu1 }
 0x326   : > { %v552_v57 = vpop.f32.mrb[2].mxu1 }
 0x327   : > { %v555_v58 = vmul.f32 0.5, %v550_v55  ;;  %v860_v59 = vpop.f32.mrb[3].mxu1 }
 0x329   : > { %v556_v60 = vadd.f32 %v555_v58, %v510_v54 }
 0x32b   : > { %557 = vst.msk [vmem:[#allocation2] sm:$0xff] %vm407_vm0, %v556_v60 }
 0x332   : > { %v1170_v61 = vld [vmem:[#allocation2] sm:$0xff] }
 0x333   : > { %v559_v62 = vsel %vm407_vm0, %v1170_v61, 0.0  ;;  %v735_v39 = vmul.f32 0.5, %v1170_v61 }
 0x334   : > { %560 = vadd.xlane.f32.xlu1 %v559_v62 }
 0x3c1   : > { %v561_v63 = vpop.xlane.xlu1 %560 }
 0x3c2   : > { %v562_v1 = vmul.f32 0.03125, %v561_v63 }
 0x3c4   : > { %v563_v2 = vsub.f32 %v1170_v61, %v562_v1 }
 0x3c6   : > { %v564_v3 = vmul.f32 %v563_v2, %v563_v2 }
 0x3c8   : > { %v565_v0 = vsel %vm407_vm0, %v564_v3, 0.0 }
 0x3c9   : > { %566 = vadd.xlane.f32.xlu1 %v565_v0 }
 0x456   : > { %v567_v6 = vpop.xlane.xlu1 %566 }
 0x457   : > { %v568_v8 = vmul.f32 0.03125, %v567_v6 }
 0x459   : > { %v569_v9 = vadd.f32 1e-05, %v568_v8 }
 0x45b   : > { %938 = vrsqrt.f32 %v569_v9 }
 0x465   : > { %v939_v10 = vpop.eup %938 }
 0x466   : > { %v571_v11 = vmul.f32 %v939_v10, %v563_v2 }
 0x468   : > { %v572_v12 = vmul.f32 %v1144_v15, %v571_v11  ;;  %v930_v15 = vld [vmem:[%s1265_s9 + $0x10] sm:$0xff]  }
 0x469   : > { %874 = vmatpush3.bf16.msra.mxu1 %v930_v15 }
 0x46a   : > { %v573_v13 = vadd.f32 %v1149_v17, %v572_v12  ;;  %v931_v17 = vld [vmem:[%s1265_s9 + $0x18] sm:$0xff]   ;;  %875 = vmatprep.subr.bf16.mxu1 %v1006_v7 }
 0x46c   : > { %v574_v14 = vpack.c.bf16 %v573_v13, %v573_v13 }
 0x46d   : > { %876 = vmatpush3.bf16.msra.mxu1 %v931_v17 }
 0x46e   : > { %866 = vmatmul.mubr.msk.bf16.vlgmr.msra.gmra.mrb[4].mxu0 %vm407_vm0, %v574_v14 }
 0x541   : > { %v650_v20 = vpop.f32.mrb[4].mxu0 }
 0x542   : > { %v651_v21 = vadd.f32 %v824_v19, %v650_v20  ;;  %v867_v22 = vpop.f32.mrb[5].mxu0 }
 0x543   : > { %v653_v23 = vpop.f32.mrb[6].mxu0 }
 0x544   : > { %v657_v24 = vmul.f32 0.044715, %v651_v21  ;;  %v868_v25 = vpop.f32.mrb[7].mxu0  ;;  %v656_v7 = vmul.f32 0.5, %v651_v21 }
 0x546   : > { %v658_v26 = vmul.f32 %v657_v24, %v651_v21 }
 0x548   : > { %v659_v27 = vmul.f32 %v658_v26, %v651_v21 }
 0x54a   : > { %v660_v28 = vadd.f32 %v659_v27, %v651_v21 }
 0x54c   : > { %v661_v29 = vmul.f32 0.7978846, %v660_v28 }
 0x54e   : > { %940 = vtanh.f32 %v661_v29 }
 0x558   : > { %v941_v30 = vpop.eup %940 }
 0x559   : > { %v663_v31 = vadd.f32 1.0, %v941_v30 }
 0x55b   : > { %v664_v32 = vmul.f32 %v663_v31, %v656_v7 }
 0x55d   : > { %v665_v33 = vpack.c.bf16 %v664_v32, %v664_v32 }
 0x55f   : > { %878 = vmatmul.mubr.msk.bf16.vlgmr.msra.gmra.mrb[4].mxu1 %vm690_vm5, %v665_v33 }
 0x632   : > { %v728_v35 = vpop.f32.mrb[4].mxu1 }
 0x633   : > { %v734_v36 = vadd.f32 %v823_v34, %v728_v35  ;;  %v879_v37 = vpop.f32.mrb[5].mxu1 }
 0x634   : > { %v731_v38 = vpop.f32.mrb[6].mxu1 }
 0x635   : > { %v736_v40 = vmul.f32 0.5, %v734_v36  ;;  %v880_v41 = vpop.f32.mrb[7].mxu1 }
 0x637   : > { %v737_v42 = vadd.f32 %v736_v40, %v735_v39 }
 0x639   : > { %738 = vst.msk [vmem:[%s377_s24] sm:$0xff] %vm407_vm0, %v737_v42 }
 0x63a   : > { %955 = shalt.err (!%p952_p3)
}
 0x63b   : > { %s956_s13 = scalar_lea.hbm %s1213_s12, 128  ;;  %s960_s29 = scalar_lea.hbm %s1267_s11, 256 }
 0x63c   : > { %p957_p4 = scmp.ne.s32.totalorder %s1213_s12, %s956_s13  ;;  %p961_p9 = scmp.lt.u32.totalorder %s1213_s12, %s1267_s11 }
 0x63d   : > { %p962_p10 = scmp.lt.u32.totalorder %s960_s29, %s956_s13  ;;  %p964_p12 = scmp.lt.u32.totalorder %s956_s13, %s1213_s12 }
 0x63e   : > { %p958_p7 = pnand %p957_p4, %p1108_p5 }
 0x63f   : > { %p963_p11 = por %p962_p10, %p961_p9 }
 0x640   : > { %p959_p8 = pneg %p958_p7 }
 0x641   : > { %p965_p13 = por %p964_p12, %p963_p11 }
 0x643   : > { %p966_p0 = pnand %p965_p13, %p959_p8 }
 0x645   : > { %969 = shalt.err (!%p966_p0)
}
 0x646   : > { %881 = dma.vmem_to_hbm [thread:$0]  (%p1108_p5), %s1215_s25, 128, %s1213_s12, %s740_s21  }
 0x647 PF: > { %p887_p1 = scmp.ge.s32.totalorder %s1004_s20, 2  ;;  %s765_s0 = sand.u32 1, %s992_s17  }
 0x648   : > { %s766_s14 = scalar_lea.sflag [#allocation4], %s765_s0 }
 0x649   : > { %p884_p2 = pnand %p887_p1, %p1112_p6 }
 0x64b   : > { %987 = dma.done.wait (!%p884_p2), %s766_s14, 128  }
 0x64c   : > { %989 = vsyncadd (!%p884_p2), %s766_s14, 4294967168  ;;  %p21_p3 = scmp.ge.s32.totalorder %s1095_s23, 4   ;;  %s1272_s17 = smov %s996_s18 }
 0x64d   : > { %s1273_s18 = smov %s1000_s19  ;;  %s1274_s19 = smov %s1106_s26 }
 0x64e   : > { %s1275_s20 = smov %s1095_s23  ;;  %23 = sbr.rel (!%p21_p3) target bundleno = 5 (0x5), region = 99 }
 0x655   :  { %771 = vsyncpa [#allocation4], 1 }
 0x656   :  { %773 = vsyncpa [#allocation4 + $0x1], 1 }

// kernel: tpu_custom_call.1
= control target key start
LH: loop header
LB: loop body
LE: loop exit
PB: predicated region body
PF: predicated region fallthrough
CT: control target
= control target key end

     0   :  { %s1256_s0 = inlined_call_operand.vmem [shape: f32[2,8,32], index: 0, kind: input, shape index: {}]   ;;  %s1257_s1 = inlined_call_operand.vmem [shape: f32[1,32], index: 1, kind: input, shape index: {}]   ;;  %s1258_s2 = inlined_call_operand.vmem [shape: f32[1,32], index: 2, kind: input, shape index: {}]   ;;  %s1259_s3 = inlined_call_operand.vmem [shape: bf16[16,8], index: 3, kind: input, shape index: {}]   ;;  %s1260_s4 = inlined_call_operand.vmem [shape: f32[16,1], index: 4, kind: input, shape index: {}]   ;;  %s1261_s5 = inlined_call_operand.vmem [shape: bf16[8,16], index: 5, kind: input, shape index: {}]   ;;  %s1262_s6 = inlined_call_operand.vmem [shape: f32[8,1], index: 6, kind: input, shape index: {}]   ;;  %s1263_s7 = inlined_call_operand.vmem [shape: bf16[32,64], index: 7, kind: input, shape index: {}]   ;;  %s1264_s8 = inlined_call_operand.vmem [shape: f32[1,64], index: 8, kind: input, shape index: {}]   ;;  %s1265_s9 = inlined_call_operand.vmem [shape: bf16[64,32], index: 9, kind: input, shape index: {}]   ;;  %s1266_s10 = inlined_call_operand.vmem [shape: f32[1,32], index: 10, kind: input, shape index: {}]   ;;  %s1267_s11 = inlined_call_operand.hbm [shape: f32[2,8,32], index: 11, kind: output, shape index: {}]  }
   0x1   :  { %1268 = sst [smem:[#allocation6_spill]] %s1256_s0 }
   0x2   :  { %16 = vsyncpa [#allocation4], 0 }
   0x3   :  { %18 = vsyncpa [#allocation4 + $0x1], 0  ;;  %s1070_s17 = smov 0   ;;  %s1072_s18 = smov 0  }
   0x4   :  { %s1074_s19 = smov 0   ;;  %s1076_s20 = smov 0  }
   0x5 LB: > { %s1091_s21 = sadd.s32 4294967295, %s1004_s20   ;;  %s812_s22 = sadd.s32 4294967294, %s1004_s20   ;;  %s1004_s20 = sphi %s1076_s20, %s1275_s20   ;;  %s1000_s19 = sphi %s1074_s19, %s1274_s19   ;;  %s996_s18 = sphi %s1072_s18, %s1273_s18   ;;  %s992_s17 = sphi %s1070_s17, %s1272_s17  }
   0x6   : > { %s1095_s23 = sadd.s32 1, %s1004_s20   ;;  %s267_s24 = sadd.s32 1, %s1000_s19 }
   0x7   : > { %s264_s25 = ssub.s32 %s1004_s20, %s1095_s23  ;;  %p277_p0 = scmp.ne.s32.totalorder %s1000_s19, %s996_s18 }
   0x8   : > { %p265_p1 = scmp.eq.s32.totalorder %s264_s25, 0  ;;  %p278_p2 = scmp.eq.s32.totalorder %s1091_s21, 1 }
   0x9   : > { %p283_p3 = scmp.ne.s32.totalorder %s996_s18, %s992_s17  ;;  %p284_p4 = scmp.eq.s32.totalorder %s812_s22, 1 }
   0xa   : > { %s1106_s26 = scalar_select %p265_p1, %s1000_s19, %s267_s24  }
   0xb   : > { %p1108_p5 = por %p278_p2, %p277_p0  ;;  %p1112_p6 = por %p284_p4, %p283_p3 }
   0xc   : > { %p815_p7 = scmp.ge.s32.totalorder %s1004_s20, 1  ;;  %p339_p8 = scmp.lt.s32.totalorder %s1004_s20, 3 }
   0xe   : > { %p340_p9 = pnand %p815_p7, %p339_p8 }
   0xf   : > { %p378_p10 = scmp.lt.s32.totalorder (!%p340_p9), %s1091_s21, 1  ;;  %vm407_vm0 = vcmask (!%p340_p9), 261120   ;;  %s1271_s0 = sld [smem:[#allocation6_spill]] (!%p340_p9)  ;;  %v1006_v7 = vmov (!%p340_p9), 0.0   ;;  %vm1007_vm1 = vmmov (!%p340_p9), 0   ;;  %v388_v8 = vld [vmem:[%s1260_s4] sm:$0xff] (!%p340_p9) }
  0x10   : > { %343 = sbr.rel (%p340_p9) target bundleno = 1607 (0x647), region = 64  ;;  %849 = vmatprep.subr.bf16.mxu0 (!%p340_p9), %v1006_v7  ;;  %855 = vmatprep.subr.bf16.mxu1 (!%p340_p9), %v1006_v7  ;;  %v1008_v9 = vmov (!%p340_p9), 0   ;;  %v389_v10 = vld [vmem:[%s1260_s4 + $0x8] sm:$0xff] (!%p340_p9)  ;;  %v1144_v15 = vld [vmem:[%s1257_s1] ss:$0 sm:$0xff] (!%p340_p9)  ;;  %vm446_vm2 = vcmask (!%p340_p9), 1043456  }
  0x11   : > { %851 = vmatprep.mubr.msk.bf16.mxu0 (!%p340_p9), %vm1007_vm1, %v1006_v7  ;;  %857 = vmatprep.mubr.msk.bf16.mxu1 (!%p340_p9), %vm1007_vm1, %v1006_v7  ;;  %v1149_v17 = vld [vmem:[%s1258_s2] ss:$0 sm:$0xff] (!%p340_p9)  ;;  %vm442_vm3 = vcmask (!%p340_p9), 64512   ;;  %vm511_vm4 = vcmask (!%p340_p9), 130048   ;;  %vm690_vm5 = vcmask (!%p340_p9), 523264   ;;  %s375_s13 = sand.u32 (!%p340_p9), 1, %s996_s18  }
  0x12   : > { %923 = vset.pattern.permute.xlu1 (!%p340_p9), %v1008_v9  ;;  %924 = vset.pattern.permute.xlu0 (!%p340_p9), %v1008_v9  ;;  %v925_v22 = vld [vmem:[%s1259_s3] sm:$0xff] (!%p340_p9)   ;;  %s834_s22 = sshll.u32 (!%p340_p9), %s1091_s21, 7  ;;  %s1009_s15 = smov (!%p340_p9), [#allocation3]  }
  0x13   : > { %392 = vperm.xlu1 (!%p340_p9), %923, %v388_v8   ;;  %v400_v23 = vld [vmem:[%s1262_s6] sm:$0xff] (!%p340_p9)  ;;  %s1213_s12 = scalar_lea.hbm (!%p340_p9), %s1267_s11, %s834_s22  ;;  %s946_s16 = sshll.u32 (!%p340_p9), %s1009_s15, 4  ;;  %s947_s16 = int_to_ptr.vmem [resolvable:$false] %s946_s16 }
  0x14   : > { %v387_v51 = vld [vmem:[%s1261_s5] sm:$0xf] (!%p340_p9) }
  0x17   : > { %s379_s29 = scalar_select %p378_p10, %s1091_s21, 1  ;;  %397 = vperm.xlu1 %923, %v389_v10  }
  0x18   : > { %s740_s21 = scalar_lea.sflag [#allocation4], %s375_s13 }
  0x19   : > { %s817_s30 = sshll.u32 %s379_s29, 3 }
  0x1a   : > { %s381_s14 = scalar_lea.vmem %s1271_s0, %s817_s30  ;;  %s948_s0 = scalar_lea.vmem %s947_s16, 256 }
  0x1b   : > { %v1123_v0 = vld [vmem:[%s381_s14] sm:$0xff]  ;;  %s816_s14 = sshll.u32 %s375_s13, 3 }
  0x1c   : > { %v408_v1 = vsel %vm407_vm0, %v1123_v0, 0.0  ;;  %v510_v54 = vmul.f32 0.5, %v1123_v0  ;;  %s377_s24 = scalar_lea.vmem [#allocation3], %s816_s14 }
  0x1d   : > { %409 = vadd.xlane.f32.xlu0 %v408_v1  ;;  %s753_s25 = sshll.u32 %s377_s24, 4  ;;  %s1215_s25 = int_to_ptr.vmem [resolvable:$true] %s753_s25 }
  0x1e   : > { %s942_s14 = scalar_lea.vmem %s1215_s25, 128  ;;  %p949_p0 = scmp.lt.s32.totalorder %s1215_s25, %s947_s16 }
  0x1f   : > { %p943_p11 = scmp.ne.s32.totalorder %s1215_s25, %s942_s14  ;;  %p950_p1 = scmp.lt.s32.totalorder %s948_s0, %s942_s14 }
  0x21   : > { %p944_p12 = pnand %p943_p11, %p1108_p5  ;;  %p951_p2 = por %p950_p1, %p949_p0 }
  0x23   : > { %p945_p13 = pneg %p944_p12 }
  0x25   : > { %p952_p3 = pnand %p951_p2, %p945_p13 }
  0x92   : > { %v393_v24 = vpop.permute.xlu1 %392 }
  0x96   : > { %v398_v28 = vpop.permute.xlu1 %397 }
  0xaa   : > { %v410_v2 = vpop.xlane.xlu0 %409 }
  0xab   : > { %v412_v3 = vmul.f32 0.03125, %v410_v2 }
  0xad   : > { %v413_v4 = vsub.f32 %v1123_v0, %v412_v3 }
  0xaf   : > { %v414_v5 = vmul.f32 %v413_v4, %v413_v4 }
  0xb1   : > { %v415_v6 = vsel %vm407_vm0, %v414_v5, 0.0  ;;  %v927_v5 = vld [vmem:[%s1263_s7 + $0x8] sm:$0xff]  }
  0xb2   : > { %416 = vadd.xlane.f32.xlu0 %v415_v6 }
  0xc8   : > { %403 = vperm.xlu0 %924, %v400_v23  }
 0x13f   : > { %v417_v11 = vpop.xlane.xlu0 %416 }
 0x140   : > { %v418_v12 = vmul.f32 0.03125, %v417_v11 }
 0x142   : > { %v419_v13 = vadd.f32 1e-05, %v418_v12 }
 0x144   : > { %932 = vrsqrt.f32 %v419_v13 }
 0x147   : > { %v404_v52 = vpop.permute.xlu0 %403 }
 0x14e   : > { %v933_v14 = vpop.eup %932 }
 0x14f   : > { %v421_v16 = vmul.f32 %v933_v14, %v413_v4  ;;  %v926_v4 = vld [vmem:[%s1263_s7] sm:$0xff]  }
 0x151   : > { %v428_v18 = vmul.f32 %v1144_v15, %v421_v16  ;;  %v928_v16 = vld [vmem:[%s1265_s9] sm:$0xff]  }
 0x153   : > { %v435_v19 = vadd.f32 %v1149_v17, %v428_v18  ;;  %v929_v18 = vld [vmem:[%s1265_s9 + $0x8] sm:$0xff]  }
 0x155   : > { %v436_v20 = vpack.c.bf16 %v435_v19, %v435_v19  ;;  %v824_v19 = vld [vmem:[%s1264_s8] ss:$0 sm:$0xff] }
 0x157   : > { %v448_v21 = vsel %vm446_vm2, %v436_v20, 0 }
 0x158   : > { %850 = vmatpush3.bf16.msra.mxu0 %v448_v21 }
 0x159   : > { %861 = vmatprep.subr.bf16.mxu0 %v1006_v7 }
 0x15b   : > { %852 = vmatmul.mubr.msk.bf16.vlgmr.msra.gmra.mrb[0].mxu0 %vm442_vm3, %v925_v22 }
 0x15c   : > { %865 = vmatprep.mubr.msk.bf16.mxu0 %vm1007_vm1, %v1006_v7  ;;  %862 = vmatpush3.bf16.msra.mxu0 %v926_v4 }
 0x15d   : > { %863 = vmatprep.subr.bf16.mxu0 %v1006_v7 }
 0x160   : > { %864 = vmatpush3.bf16.msra.mxu0 %v927_v5 }
 0x22e   : > { %v484_v25 = vpop.f32.mrb[0].mxu0 }
 0x22f   : > { %v485_v26 = vadd.f32 %v484_v25, %v393_v24  ;;  %v853_v27 = vpop.f32.mrb[1].mxu0 }
 0x230   : > { %v487_v29 = vpop.f32.mrb[2].mxu0 }
 0x231   : > { %v493_v30 = vmul.f32 0.044715, %v485_v26  ;;  %v488_v31 = vadd.f32 %v487_v29, %v398_v28  ;;  %v854_v32 = vpop.f32.mrb[3].mxu0  ;;  %v491_v45 = vmul.f32 0.5, %v485_v26 }
 0x233   : > { %v495_v33 = vmul.f32 %v493_v30, %v485_v26  ;;  %v494_v34 = vmul.f32 0.044715, %v488_v31  ;;  %v492_v46 = vmul.f32 0.5, %v488_v31 }
 0x235   : > { %v496_v35 = vmul.f32 %v494_v34, %v488_v31  ;;  %v497_v36 = vmul.f32 %v495_v33, %v485_v26  ;;  %v823_v34 = vld [vmem:[%s1266_s10] ss:$0 sm:$0xff] }
 0x237   : > { %v498_v37 = vmul.f32 %v496_v35, %v488_v31  ;;  %v499_v38 = vadd.f32 %v497_v36, %v485_v26 }
 0x239   : > { %v500_v39 = vadd.f32 %v498_v37, %v488_v31  ;;  %v501_v40 = vmul.f32 0.7978846, %v499_v38 }
 0x23b   : > { %v502_v41 = vmul.f32 0.7978846, %v500_v39  ;;  %934 = vtanh.f32 %v501_v40 }
 0x23d   : > { %936 = vtanh.f32 %v502_v41 }
 0x245   : > { %v935_v42 = vpop.eup %934 }
 0x246   : > { %v505_v43 = vadd.f32 1.0, %v935_v42 }
 0x247   : > { %v937_v44 = vpop.eup %936 }
 0x248   : > { %v506_v47 = vadd.f32 1.0, %v937_v44  ;;  %v507_v48 = vmul.f32 %v505_v43, %v491_v45 }
 0x24a   : > { %v508_v49 = vmul.f32 %v506_v47, %v492_v46 }
 0x24c   : > { %v509_v50 = vpack.c.bf16 %v508_v49, %v507_v48 }
 0x24e   : > { %856 = vmatpush3.bf16.msra.mxu1 %v509_v50 }
 0x24f   : > { %869 = vmatprep.subr.bf16.mxu1 %v1006_v7 }
 0x251   : > { %858 = vmatmul.mubr.msk.bf16.vlgmr.msra.gmra.mrb[0].mxu1 %vm511_vm4, %v387_v51 }
 0x252   : > { %877 = vmatprep.mubr.msk.bf16.mxu1 %vm1007_vm1, %v1006_v7  ;;  %870 = vmatpush3.bf16.msra.mxu1 %v928_v16 }
 0x253   : > { %871 = vmatprep.subr.bf16.mxu1 %v1006_v7 }
 0x256   : > { %872 = vmatpush3.bf16.msra.mxu1 %v929_v18 }
 0x257   : > { %873 = vmatprep.subr.bf16.mxu1 %v1006_v7 }
 0x324   : > { %v549_v53 = vpop.f32.mrb[0].mxu1 }
 0x325   : > { %v550_v55 = vadd.f32 %v549_v53, %v404_v52  ;;  %v859_v56 = vpop.f32.mrb[1].mxu1 }
 0x326   : > { %v552_v57 = vpop.f32.mrb[2].mxu1 }
 0x327   : > { %v555_v58 = vmul.f32 0.5, %v550_v55  ;;  %v860_v59 = vpop.f32.mrb[3].mxu1 }
 0x329   : > { %v556_v60 = vadd.f32 %v555_v58, %v510_v54 }
 0x32b   : > { %557 = vst.msk [vmem:[#allocation2] sm:$0xff] %vm407_vm0, %v556_v60 }
 0x332   : > { %v1170_v61 = vld [vmem:[#allocation2] sm:$0xff] }
 0x333   : > { %v559_v62 = vsel %vm407_vm0, %v1170_v61, 0.0  ;;  %v735_v39 = vmul.f32 0.5, %v1170_v61 }
 0x334   : > { %560 = vadd.xlane.f32.xlu1 %v559_v62 }
 0x3c1   : > { %v561_v63 = vpop.xlane.xlu1 %560 }
 0x3c2   : > { %v562_v1 = vmul.f32 0.03125, %v561_v63 }
 0x3c4   : > { %v563_v2 = vsub.f32 %v1170_v61, %v562_v1 }
 0x3c6   : > { %v564_v3 = vmul.f32 %v563_v2, %v563_v2 }
 0x3c8   : > { %v565_v0 = vsel %vm407_vm0, %v564_v3, 0.0 }
 0x3c9   : > { %566 = vadd.xlane.f32.xlu1 %v565_v0 }
 0x456   : > { %v567_v6 = vpop.xlane.xlu1 %566 }
 0x457   : > { %v568_v8 = vmul.f32 0.03125, %v567_v6 }
 0x459   : > { %v569_v9 = vadd.f32 1e-05, %v568_v8 }
 0x45b   : > { %938 = vrsqrt.f32 %v569_v9 }
 0x465   : > { %v939_v10 = vpop.eup %938 }
 0x466   : > { %v571_v11 = vmul.f32 %v939_v10, %v563_v2 }
 0x468   : > { %v572_v12 = vmul.f32 %v1144_v15, %v571_v11  ;;  %v930_v15 = vld [vmem:[%s1265_s9 + $0x10] sm:$0xff]  }
 0x469   : > { %874 = vmatpush3.bf16.msra.mxu1 %v930_v15 }
 0x46a   : > { %v573_v13 = vadd.f32 %v1149_v17, %v572_v12  ;;  %v931_v17 = vld [vmem:[%s1265_s9 + $0x18] sm:$0xff]   ;;  %875 = vmatprep.subr.bf16.mxu1 %v1006_v7 }
 0x46c   : > { %v574_v14 = vpack.c.bf16 %v573_v13, %v573_v13 }
 0x46d   : > { %876 = vmatpush3.bf16.msra.mxu1 %v931_v17 }
 0x46e   : > { %866 = vmatmul.mubr.msk.bf16.vlgmr.msra.gmra.mrb[4].mxu0 %vm407_vm0, %v574_v14 }
 0x541   : > { %v650_v20 = vpop.f32.mrb[4].mxu0 }
 0x542   : > { %v651_v21 = vadd.f32 %v824_v19, %v650_v20  ;;  %v867_v22 = vpop.f32.mrb[5].mxu0 }
 0x543   : > { %v653_v23 = vpop.f32.mrb[6].mxu0 }
 0x544   : > { %v657_v24 = vmul.f32 0.044715, %v651_v21  ;;  %v868_v25 = vpop.f32.mrb[7].mxu0  ;;  %v656_v7 = vmul.f32 0.5, %v651_v21 }
 0x546   : > { %v658_v26 = vmul.f32 %v657_v24, %v651_v21 }
 0x548   : > { %v659_v27 = vmul.f32 %v658_v26, %v651_v21 }
 0x54a   : > { %v660_v28 = vadd.f32 %v659_v27, %v651_v21 }
 0x54c   : > { %v661_v29 = vmul.f32 0.7978846, %v660_v28 }
 0x54e   : > { %940 = vtanh.f32 %v661_v29 }
 0x558   : > { %v941_v30 = vpop.eup %940 }
 0x559   : > { %v663_v31 = vadd.f32 1.0, %v941_v30 }
 0x55b   : > { %v664_v32 = vmul.f32 %v663_v31, %v656_v7 }
 0x55d   : > { %v665_v33 = vpack.c.bf16 %v664_v32, %v664_v32 }
 0x55f   : > { %878 = vmatmul.mubr.msk.bf16.vlgmr.msra.gmra.mrb[4].mxu1 %vm690_vm5, %v665_v33 }
 0x632   : > { %v728_v35 = vpop.f32.mrb[4].mxu1 }
 0x633   : > { %v734_v36 = vadd.f32 %v823_v34, %v728_v35  ;;  %v879_v37 = vpop.f32.mrb[5].mxu1 }
 0x634   : > { %v731_v38 = vpop.f32.mrb[6].mxu1 }
 0x635   : > { %v736_v40 = vmul.f32 0.5, %v734_v36  ;;  %v880_v41 = vpop.f32.mrb[7].mxu1 }
 0x637   : > { %v737_v42 = vadd.f32 %v736_v40, %v735_v39 }
 0x639   : > { %738 = vst.msk [vmem:[%s377_s24] sm:$0xff] %vm407_vm0, %v737_v42 }
 0x63a   : > { %955 = shalt.err (!%p952_p3)
}
 0x63b   : > { %s956_s13 = scalar_lea.hbm %s1213_s12, 128  ;;  %s960_s29 = scalar_lea.hbm %s1267_s11, 256 }
 0x63c   : > { %p957_p4 = scmp.ne.s32.totalorder %s1213_s12, %s956_s13  ;;  %p961_p9 = scmp.lt.u32.totalorder %s1213_s12, %s1267_s11 }
 0x63d   : > { %p962_p10 = scmp.lt.u32.totalorder %s960_s29, %s956_s13  ;;  %p964_p12 = scmp.lt.u32.totalorder %s956_s13, %s1213_s12 }
 0x63e   : > { %p958_p7 = pnand %p957_p4, %p1108_p5 }
 0x63f   : > { %p963_p11 = por %p962_p10, %p961_p9 }
 0x640   : > { %p959_p8 = pneg %p958_p7 }
 0x641   : > { %p965_p13 = por %p964_p12, %p963_p11 }
 0x643   : > { %p966_p0 = pnand %p965_p13, %p959_p8 }
 0x645   : > { %969 = shalt.err (!%p966_p0)
}
 0x646   : > { %881 = dma.vmem_to_hbm [thread:$0]  (%p1108_p5), %s1215_s25, 128, %s1213_s12, %s740_s21  }
 0x647 PF: > { %p887_p1 = scmp.ge.s32.totalorder %s1004_s20, 2  ;;  %s765_s0 = sand.u32 1, %s992_s17  }
 0x648   : > { %s766_s14 = scalar_lea.sflag [#allocation4], %s765_s0 }
 0x649   : > { %p884_p2 = pnand %p887_p1, %p1112_p6 }
 0x64b   : > { %987 = dma.done.wait (!%p884_p2), %s766_s14, 128  }
 0x64c   : > { %989 = vsyncadd (!%p884_p2), %s766_s14, 4294967168  ;;  %p21_p3 = scmp.ge.s32.totalorder %s1095_s23, 4   ;;  %s1272_s17 = smov %s996_s18 }
 0x64d   : > { %s1273_s18 = smov %s1000_s19  ;;  %s1274_s19 = smov %s1106_s26 }
 0x64e   : > { %s1275_s20 = smov %s1095_s23  ;;  %23 = sbr.rel (!%p21_p3) target bundleno = 5 (0x5), region = 99 }
 0x655   :  { %771 = vsyncpa [#allocation4], 1 }
 0x656   :  { %773 = vsyncpa [#allocation4 + $0x1], 1 }

</bundles_post_ra>
